<compile_context>
chip_gen: v6e
topology: v6e:2x2x1
jax: 0.10.0
libtpu: 0.0.40
codegen_flags: <defaults>
</compile_context>

<pallas_src>
import functools
import math

import jax
import jax.numpy as jnp
from jax.experimental import pallas as pl
from jax.experimental.pallas import tpu as pltpu

LANE = 128                      # channel lane padding multiple (keep 128 on v5e/v6e/v7x)
_MIN_VMEM = 32 * 1024 * 1024
_MAX_VMEM = 64 * 1024 * 1024


# ----------------------------- small helpers ---------------------------------

def _make_divisible(ch, divisor=8, min_ch=None):
    if min_ch is None:
        min_ch = divisor
    new_ch = max(min_ch, int(ch + divisor / 2) // divisor * divisor)
    if new_ch < 0.9 * ch:
        new_ch += divisor
    return new_ch


def _round_up(v, m):
    return ((v + m - 1) // m) * m


def _pad_to(a, shape):
    pads = [(0, t - s) for s, t in zip(a.shape, shape)]
    return jnp.pad(a, pads)


def _fold_bn(gamma, beta, mean, var, eps=1e-5):
    scale = gamma / jnp.sqrt(var + eps)
    return scale, beta - mean * scale


def _fold_bn_d(bn):
    return _fold_bn(bn["g"], bn["b"], bn["m"], bn["v"])


def _vmem_limit(nbytes):
    return int(max(_MIN_VMEM, min(int(nbytes), _MAX_VMEM)))


def _choose_row_tile(m):
    """Rows per grid step for a plain matmul layer (bf16 activations)."""
    if m % 16:
        return m                                   # full-array block (always legal)
    best, best_key = m, None
    for steps in range(1, min(m // 16, 16) + 1):
        if m % steps:
            continue
        t = m // steps
        if steps > 1 and t % 16:
            continue
        key = (steps >= 4, 512 <= t <= 1024, steps % 2 == 0, -abs(t - 768), steps)
        if best_key is None or key > best_key:
            best, best_key = t, key
    return best


def _choose_tile_n(n, l_in, l_out):
    """Batch elements per grid step for an InvertedResidual block."""
    best_t, best_key = n, None
    for t in range(1, n + 1):
        if n % t:
            continue
        g = n // t
        tm_in, tm_out = t * l_in, t * l_out
        if g > 1 and (tm_in % 16 or tm_out % 16):   # keep non-full blocks sublane aligned
            continue
        key = (min(g, 8) >= 4, 512 <= tm_in <= 1024, g % 2 == 0, -abs(tm_in - 768), g)
        if best_key is None or key > best_key:
            best_key, best_t = key, t
    return best_t


# ----------------------------- kernel bodies ---------------------------------

def _matmul_bn_act_kernel(x_ref, w_ref, b_ref, o_ref, *, relu6):
    out = jnp.dot(x_ref[...], w_ref[...], preferred_element_type=jnp.float32)
    out = out + b_ref[...]
    if relu6:
        out = jnp.clip(out, 0.0, 6.0)
    o_ref[...] = out.astype(o_ref.dtype)


def _depthwise_project(h, x, wd_ref, bd_ref, w2_ref, b2_ref, *,
                       l_in, stride, use_shortcut):
    """3-tap depthwise conv (+BN+ReLU6) and 1x1 projection (+BN) on a collapsed block.

    h: (M, h_p) f32 expanded activations (padded lanes are zero).
    x: (M, c_in_p) bf16 block input (used only for the residual add).
    """
    m_rows, h_p = h.shape
    wd = wd_ref[...]                                 # (3, h_p) f32, BN-folded

    if stride == 1:
        left = pltpu.roll(h, shift=1, axis=0)              # left[r]  = h[r-1]
        right = pltpu.roll(h, shift=m_rows - 1, axis=0)     # right[r] = h[r+1]
        pos = jax.lax.broadcasted_iota(jnp.int32, (m_rows, 1), 0) % l_in
        left = left * (pos != 0).astype(jnp.float32)        # zero the pad-tap rows
        right = right * (pos != l_in - 1).astype(jnp.float32)
        acc = left * wd[0:1, :] + h * wd[1:2, :] + right * wd[2:3, :]
    else:
        # stride == 2: de-interleave first so only kept rows pay for the FMAs.
        l_out = l_in // 2
        h2 = h.reshape(m_rows // 2, 2, h_p)
        even = h2[:, 0, :]                                  # rows 2j   -> centre tap
        odd = h2[:, 1, :]                                    # rows 2j+1 -> right tap
        left = pltpu.roll(odd, shift=1, axis=0)              # rows 2j-1
        pos = jax.lax.broadcasted_iota(jnp.int32, (m_rows // 2, 1), 0) % l_out
        left = left * (pos != 0).astype(jnp.float32)
        acc = left * wd[0:1, :] + even * wd[1:2, :] + odd * wd[2:3, :]

    y = jnp.clip(acc + bd_ref[...], 0.0, 6.0)                # folded BN + ReLU6, f32
    out = jnp.dot(y.astype(jnp.bfloat16), w2_ref[...],
                  preferred_element_type=jnp.float32)        # 1x1 projection on the MXU
    out = out + b2_ref[...]
    if use_shortcut:
        out = out + x.astype(jnp.float32)                    # residual add in f32
    return out


def _ir_expand_kernel(x_ref, w1_ref, b1_ref, wd_ref, bd_ref, w2_ref, b2_ref,
                      o_ref, *, l_in, stride, use_shortcut):
    x = x_ref[...]                                                    # (M, c_in_p) bf16
    h = jnp.dot(x, w1_ref[...], preferred_element_type=jnp.float32)   # 1x1 expand (MXU)
    h = jnp.clip(h + b1_ref[...], 0.0, 6.0)                           # folded BN + ReLU6
    out = _depthwise_project(h, x, wd_ref, bd_ref, w2_ref, b2_ref,
                             l_in=l_in, stride=stride, use_shortcut=use_shortcut)
    o_ref[...] = out.astype(o_ref.dtype)


def _ir_noexpand_kernel(x_ref, wd_ref, bd_ref, w2_ref, b2_ref, o_ref, *,
                        l_in, stride, use_shortcut):
    x = x_ref[...]
    out = _depthwise_project(x.astype(jnp.float32), x, wd_ref, bd_ref, w2_ref, b2_ref,
                             l_in=l_in, stride=stride, use_shortcut=use_shortcut)
    o_ref[...] = out.astype(o_ref.dtype)


def _avgpool_fc_kernel(x_ref, w_ref, b_ref, o_ref):
    x = x_ref[...].astype(jnp.float32)                   # (N, L, c_p)
    pooled = jnp.mean(x, axis=1)                         # AdaptiveAvgPool1d(1)
    out = jnp.dot(pooled.astype(jnp.bfloat16), w_ref[...],
                  preferred_element_type=jnp.float32) + b_ref[...]
    o_ref[...] = out


# --------------------------- pallas_call builders ------------------------------

@functools.lru_cache(maxsize=None)
def _build_matmul_bn_act_call(m, k, n_out, relu6):
    tm = _choose_row_tile(m)
    grid = (m // tm,)
    kern = functools.partial(_matmul_bn_act_kernel, relu6=relu6)
    cost = pl.CostEstimate(flops=int(2 * m * k * n_out), transcendentals=0,
                           bytes_accessed=int(m * k * 2 + k * n_out * 2
                                              + n_out * 4 + m * n_out * 2))
    cparams = pltpu.CompilerParams(
        dimension_semantics=("parallel",),
        vmem_limit_bytes=_vmem_limit(4 * (tm * k + tm * n_out) * 2
                                     + k * n_out * 2 + n_out * 4))
    call = pl.pallas_call(
        kern,
        out_shape=jax.ShapeDtypeStruct((m, n_out), jnp.bfloat16),
        grid=grid,
        in_specs=[pl.BlockSpec((tm, k), lambda i: (i, 0)),
                  pl.BlockSpec((k, n_out), lambda i: (0, 0)),
                  pl.BlockSpec((1, n_out), lambda i: (0, 0))],
        out_specs=pl.BlockSpec((tm, n_out), lambda i: (i, 0)),
        compiler_params=cparams, cost_estimate=cost)
    return jax.jit(call)


def _matmul_bn_act(x, w, b, *, relu6):
    m, k = x.shape
    n_out = w.shape[1]
    return _build_matmul_bn_act_call(m, k, n_out, bool(relu6))(x, w, b)


@functools.lru_cache(maxsize=None)
def _build_invres_call(n_eff, l_in, c_in_p, h_p, c_out_p, stride, expand, use_shortcut):
    l_out = l_in if stride == 1 else l_in // 2
    tile_n = _choose_tile_n(n_eff, l_in, l_out)
    grid_n = n_eff // tile_n
    tm_in, tm_out = tile_n * l_in, tile_n * l_out

    x_spec = pl.BlockSpec((tm_in, c_in_p), lambda i: (i, 0))
    o_spec = pl.BlockSpec((tm_out, c_out_p), lambda i: (i, 0))
    out_shape = jax.ShapeDtypeStruct((n_eff * l_out, c_out_p), jnp.bfloat16)

    def _w_spec(shape):
        nd = len(shape)
        return pl.BlockSpec(shape, lambda i, _nd=nd: (0,) * _nd)

    w_bytes = 3 * h_p * 4 + h_p * 4 + h_p * c_out_p * 2 + c_out_p * 4
    flops = 2 * (n_eff * l_out) * h_p * c_out_p + 8 * (n_eff * l_out) * h_p
    if expand:
        w_bytes += c_in_p * h_p * 2 + h_p * 4
        flops += 2 * (n_eff * l_in) * c_in_p * h_p
    cost = pl.CostEstimate(
        flops=int(flops), transcendentals=0,
        bytes_accessed=int(n_eff * l_in * c_in_p * 2 + w_bytes
                           + n_eff * l_out * c_out_p * 2))
    cparams = pltpu.CompilerParams(
        dimension_semantics=("parallel",),
        vmem_limit_bytes=_vmem_limit(2 * (tm_in * c_in_p + tm_out * c_out_p) * 2
                                     + w_bytes + 8 * tm_in * h_p * 4))

    if expand:
        kern = functools.partial(_ir_expand_kernel, l_in=l_in, stride=stride,
                                 use_shortcut=use_shortcut)
        in_specs = [x_spec, _w_spec((c_in_p, h_p)), _w_spec((1, h_p)),
                    _w_spec((3, h_p)), _w_spec((1, h_p)),
                    _w_spec((h_p, c_out_p)), _w_spec((1, c_out_p))]
    else:
        kern = functools.partial(_ir_noexpand_kernel, l_in=l_in, stride=stride,
                                 use_shortcut=use_shortcut)
        in_specs = [x_spec, _w_spec((3, h_p)), _w_spec((1, h_p)),
                    _w_spec((h_p, c_out_p)), _w_spec((1, c_out_p))]

    call = pl.pallas_call(kern, out_shape=out_shape, grid=(grid_n,),
                          in_specs=in_specs, out_specs=o_spec,
                          compiler_params=cparams, cost_estimate=cost)
    return jax.jit(call)


def _invres(x, p, *, n, l_in):
    """x: (n * l_in, c_in_p) bf16 lane-dense slab -> (n * l_out, c_out_p) bf16 slab."""
    stride = p["stride"]
    l_out = l_in if stride == 1 else l_in // 2
    if stride == 2:
        assert l_in % 2 == 0
    c_in_p, h_p, c_out_p = x.shape[1], p["wd"].shape[1], p["w2"].shape[1]

    # Zero "fake" batch elements keep rolled / de-interleaved row counts sublane aligned.
    required = 16 if stride == 2 else 8
    n_eff = n
    while (n_eff * l_in) % required:
        n_eff += 1
    if n_eff != n:
        x = jnp.pad(x, ((0, (n_eff - n) * l_in), (0, 0)))

    call = _build_invres_call(n_eff, l_in, c_in_p, h_p, c_out_p, stride,
                              bool(p["expand"]), bool(p["use_shortcut"]))
    if p["expand"]:
        out = call(x, p["w1"], p["b1"], p["wd"], p["bd"], p["w2"], p["b2"])
    else:
        out = call(x, p["wd"], p["bd"], p["w2"], p["b2"])
    if n_eff != n:
        out = out[: n * l_out]
    return out


def _avgpool_fc(x, w, b, *, n, l):
    c_p, ncls_p = x.shape[1], w.shape[1]
    x3 = x.reshape(n, l, c_p)
    cost = pl.CostEstimate(flops=int(2 * n * c_p * ncls_p + n * l * c_p),
                           transcendentals=0,
                           bytes_accessed=int(x3.size * 2 + w.size * 2
                                              + (n + 1) * ncls_p * 4))
    return pl.pallas_call(
        _avgpool_fc_kernel,
        out_shape=jax.ShapeDtypeStruct((n, ncls_p), jnp.float32),
        grid=(1,),
        in_specs=[pl.BlockSpec((n, l, c_p), lambda i: (0, 0, 0)),
                  pl.BlockSpec((c_p, ncls_p), lambda i: (0, 0)),
                  pl.BlockSpec((1, ncls_p), lambda i: (0, 0))],
        out_specs=pl.BlockSpec((n, ncls_p), lambda i: (0, 0)),
        compiler_params=pltpu.CompilerParams(dimension_semantics=("arbitrary",)),
        cost_estimate=cost,
    )(x3, w, b)


# ----------------------- parameters (PyTorch layout) ---------------------------

def init_raw_params(key, num_classes=40, alpha=1.0):
    settings = [[1, 16, 1, 1], [6, 24, 2, 2], [6, 32, 3, 2], [6, 64, 4, 2],
                [6, 96, 3, 1], [6, 160, 3, 2], [6, 320, 1, 1]]
    input_channel = _make_divisible(32 * alpha)
    last_channel = _make_divisible(1280 * alpha)

    keys = iter(jax.random.split(key, 512))
    nk = lambda: next(keys)

    def conv_init(shape, fan_in):
        return jax.random.normal(nk(), shape, jnp.float32) / math.sqrt(fan_in)

    def bn_init(c):
        ks = jax.random.split(nk(), 4)
        return dict(g=1.0 + 0.1 * jax.random.normal(ks[0], (c,), jnp.float32),
                    b=0.1 * jax.random.normal(ks[1], (c,), jnp.float32),
                    m=0.1 * jax.random.normal(ks[2], (c,), jnp.float32),
                    v=1.0 + 0.1 * jax.random.uniform(ks[3], (c,), jnp.float32))

    raw = {"stem": dict(conv_w=conv_init((input_channel, 1, 3), 3), bn=bn_init(input_channel))}
    blocks, c_in = [], input_channel
    for t, c, nrep, s in settings:
        c_out = _make_divisible(c * alpha)
        for i in range(nrep):
            stride = s if i == 0 else 1
            hidden = c_in * t
            blk = {"cfg": dict(c_in=c_in, c_out=c_out, stride=stride, expand_ratio=t)}
            if t != 1:
                blk["conv1_w"] = conv_init((hidden, c_in, 1), c_in)
                blk["bn1"] = bn_init(hidden)
            blk["dw_w"] = conv_init((hidden, 1, 3), 3)
            blk["bn2"] = bn_init(hidden)
            blk["conv3_w"] = conv_init((c_out, hidden, 1), hidden)
            blk["bn3"] = bn_init(c_out)
            blocks.append(blk)
            c_in = c_out
    raw["blocks"] = blocks
    raw["head"] = dict(conv_w=conv_init((last_channel, c_in, 1), c_in), bn=bn_init(last_channel))
    raw["fc_w"] = 0.05 * jax.random.normal(nk(), (num_classes, last_channel), jnp.float32)
    raw["fc_b"] = 0.05 * jax.random.normal(nk(), (num_classes,), jnp.float32)
    return raw


def prepare_pallas_params(raw):
    prep = {}
    # stem ConvBNReLU(1, 32, k=3, s=2): fold BN, lay out as an (128, c_p) matmul weight
    st = raw["stem"]
    c_stem = st["conv_w"].shape[0]
    c_stem_p = _round_up(c_stem, LANE)
    s, bi = _fold_bn_d(st["bn"])
    w = (st["conv_w"][:, 0, :] * s[:, None]).T                       # (3, c_stem)
    prep["stem_w"] = _pad_to(w, (LANE, c_stem_p)).astype(jnp.bfloat16)
    prep["stem_b"] = _pad_to(bi[None, :], (1, c_stem_p)).astype(jnp.float32)

    blocks = []
    for blk in raw["blocks"]:
        cfg = blk["cfg"]
        c_in, c_out, t, stride = cfg["c_in"], cfg["c_out"], cfg["expand_ratio"], cfg["stride"]
        hidden = c_in * t
        c_in_p, h_p, c_out_p = (_round_up(c_in, LANE), _round_up(hidden, LANE),
                                _round_up(c_out, LANE))
        p = dict(stride=stride, expand=(t != 1),
                 use_shortcut=(stride == 1 and c_in == c_out))
        if t != 1:
            s1, b1 = _fold_bn_d(blk["bn1"])
            p["w1"] = _pad_to(blk["conv1_w"][:, :, 0].T * s1[None, :],
                              (c_in_p, h_p)).astype(jnp.bfloat16)
            p["b1"] = _pad_to(b1[None, :], (1, h_p)).astype(jnp.float32)
        s2, b2 = _fold_bn_d(blk["bn2"])
        p["wd"] = _pad_to(blk["dw_w"][:, 0, :].T * s2[None, :], (3, h_p)).astype(jnp.float32)
        p["bd"] = _pad_to(b2[None, :], (1, h_p)).astype(jnp.float32)
        s3, b3 = _fold_bn_d(blk["bn3"])
        p["w2"] = _pad_to(blk["conv3_w"][:, :, 0].T * s3[None, :],
                          (h_p, c_out_p)).astype(jnp.bfloat16)
        p["b2"] = _pad_to(b3[None, :], (1, c_out_p)).astype(jnp.float32)
        blocks.append(p)
    prep["blocks"] = blocks

    hd = raw["head"]
    c_last, c_in_head = hd["conv_w"].shape[0], hd["conv_w"].shape[1]
    c_last_p, c_in_head_p = _round_up(c_last, LANE), _round_up(c_in_head, LANE)
    s, bi = _fold_bn_d(hd["bn"])
    prep["head_w"] = _pad_to(hd["conv_w"][:, :, 0].T * s[None, :],
                             (c_in_head_p, c_last_p)).astype(jnp.bfloat16)
    prep["head_b"] = _pad_to(bi[None, :], (1, c_last_p)).astype(jnp.float32)

    num_classes = raw["fc_w"].shape[0]
    ncls_p = _round_up(num_classes, LANE)
    prep["fc_w"] = _pad_to(raw["fc_w"].T, (c_last_p, ncls_p)).astype(jnp.bfloat16)
    prep["fc_b"] = _pad_to(raw["fc_b"][None, :], (1, ncls_p)).astype(jnp.float32)
    prep["num_classes"] = num_classes
    return prep


# ------------------------------ forward passes ---------------------------------

def _im2col_stride2_k3(x_1d):
    """x_1d: (N, L) f32 -> (N * L//2, 3) taps of the stride-2, pad-1, k=3 conv."""
    n, L = x_1d.shape
    xp = jnp.pad(x_1d, ((0, 0), (1, 1)))
    taps = jnp.stack([xp[:, 0:L:2], xp[:, 1:L + 1:2], xp[:, 2:L + 2:2]], axis=-1)
    return taps.reshape(n * (L // 2), 3)


def mobilenetv2_forward_pallas(x_ncl, prep):
    """x_ncl: (N, 1, L) float32 (PyTorch NCW). Returns (N, num_classes) float32 logits."""
    n, c0, L = x_ncl.shape
    assert c0 == 1 and L % 32 == 0, "demo expects 1 input channel and L divisible by 32"

    # stem: ConvBNReLU(1, 32, k=3, s=2) as an (M, 128) x (128, C) matmul
    patches = _pad_to(_im2col_stride2_k3(x_ncl[:, 0, :]), (n * (L // 2), LANE))
    act = _matmul_bn_act(patches.astype(jnp.bfloat16), prep["stem_w"], prep["stem_b"],
                         relu6=True)
    l_cur = L // 2

    # inverted residual blocks: chained lane-dense, channel-padded bf16 slabs
    for p in prep["blocks"]:
        act = _invres(act, p, n=n, l_in=l_cur)
        l_cur = l_cur if p["stride"] == 1 else l_cur // 2

    # head: ConvBNReLU(320, 1280, k=1)
    act = _matmul_bn_act(act, prep["head_w"], prep["head_b"], relu6=True)

    # avgpool + classifier (Dropout is the identity in inference)
    logits = _avgpool_fc(act, prep["fc_w"], prep["fc_b"], n=n, l=l_cur)
    return logits[:, :prep["num_classes"]]


def mobilenetv2_forward_reference(x_ncl, raw):
    """Pure-JAX mirror with the same folded-BN / bf16 cast points as the Pallas path."""
    n, _, L = x_ncl.shape
    bf = jnp.bfloat16

    st = raw["stem"]
    s, bi = _fold_bn_d(st["bn"])
    w = (st["conv_w"][:, 0, :] * s[:, None]).T
    patches = _im2col_stride2_k3(x_ncl[:, 0, :]).reshape(n, L // 2, 3)
    h = jnp.einsum("nlk,kc->nlc", patches.astype(bf), w.astype(bf),
                   preferred_element_type=jnp.float32) + bi[None, None, :]
    act = jnp.clip(h, 0.0, 6.0).astype(bf)

    for blk in raw["blocks"]:
        cfg = blk["cfg"]
        stride, t, c_out = cfg["stride"], cfg["expand_ratio"], cfg["c_out"]
        c_in = act.shape[-1]
        use_shortcut = stride == 1 and c_in == c_out
        if t != 1:
            s1, b1 = _fold_bn_d(blk["bn1"])
            w1 = (blk["conv1_w"][:, :, 0].T * s1[None, :]).astype(bf)
            h = jnp.einsum("nlc,ch->nlh", act, w1, preferred_element_type=jnp.float32)
            h = jnp.clip(h + b1[None, None, :], 0.0, 6.0)
        else:
            h = act.astype(jnp.float32)
        s2, b2 = _fold_bn_d(blk["bn2"])
        wd = blk["dw_w"][:, 0, :].T * s2[None, :]                    # (3, hidden)
        l_in = h.shape[1]
        l_out = l_in if stride == 1 else l_in // 2
        hp = jnp.pad(h, ((0, 0), (1, 1), (0, 0)))
        acc = sum(hp[:, k:k + stride * l_out:stride, :] * wd[k][None, None, :]
                  for k in range(3))
        y = jnp.clip(acc + b2[None, None, :], 0.0, 6.0)
        s3, b3 = _fold_bn_d(blk["bn3"])
        w2 = (blk["conv3_w"][:, :, 0].T * s3[None, :]).astype(bf)
        out = jnp.einsum("nlh,ho->nlo", y.astype(bf), w2,
                         preferred_element_type=jnp.float32) + b3[None, None, :]
        if use_shortcut:
            out = out + act.astype(jnp.float32)
        act = out.astype(bf)

    hd = raw["head"]
    s, bi = _fold_bn_d(hd["bn"])
    w = (hd["conv_w"][:, :, 0].T * s[None, :]).astype(bf)
    h = jnp.einsum("nlc,cd->nld", act, w, preferred_element_type=jnp.float32)
    act = jnp.clip(h + bi[None, None, :], 0.0, 6.0).astype(bf)

    pooled = jnp.mean(act.astype(jnp.float32), axis=1).astype(bf)
    logits = jnp.einsum("nc,co->no", pooled, raw["fc_w"].T.astype(bf),
                        preferred_element_type=jnp.float32) + raw["fc_b"][None, :]
    return logits


# ------------------------------ test harness ----------------------------------

if __name__ == "__main__":
    key = jax.random.PRNGKey(0)
    k_params, k_x = jax.random.split(key)

    N, L, NUM_CLASSES = 2, 64, 40                       # small 1-D signal: (2, 1, 64)
    raw = init_raw_params(k_params, num_classes=NUM_CLASSES, alpha=1.0)
    prep = prepare_pallas_params(raw)
    x = jax.random.normal(k_x, (N, 1, L), jnp.float32)

    logits = mobilenetv2_forward_pallas(x, prep)
    logits = jax.block_until_ready(logits)

    ref = jax.block_until_ready(mobilenetv2_forward_reference(x, raw))

    assert logits.shape == (N, NUM_CLASSES), logits.shape
    assert bool(jnp.all(jnp.isfinite(logits)))
    max_err = float(jnp.max(jnp.abs(logits - ref)))
    assert jnp.allclose(logits, ref, atol=3e-2, rtol=3e-2), ("mismatch", max_err)
    print("KERNEL_OK")
</pallas_src>

<mosaic_0001>
module attributes {stable_mosaic.version = 11 : i64} {
  func.func @_matmul_bn_act_kernel(%arg0: i32, %arg1: memref<16x128xbf16, #tpu.memory_space<vmem>>, %arg2: memref<128x128xbf16, #tpu.memory_space<vmem>>, %arg3: memref<1x128xf32, #tpu.memory_space<vmem>>, %arg4: memref<16x128xbf16, #tpu.memory_space<vmem>>) attributes {dimension_semantics = [#tpu.dimension_semantics<parallel>], iteration_bounds = array<i64: 4>, scalar_prefetch = 0 : i64, scratch_operands = 0 : i64, tpu.core_type = #tpu.core_type<tc>, window_params = [{transform_indices = @transform_0, window_bounds = array<i64: 16, 128>}, {pipeline_mode = #tpu.pipeline_mode<synchronous>, transform_indices = @transform_1, window_bounds = array<i64: 128, 128>}, {pipeline_mode = #tpu.pipeline_mode<synchronous>, transform_indices = @transform_2, window_bounds = array<i64: 1, 128>}, {transform_indices = @transform_3, window_bounds = array<i64: 16, 128>}]} {
    %c0 = arith.constant 0 : index
    %c0_0 = arith.constant 0 : index
    %0 = vector.load %arg1[%c0, %c0_0] : memref<16x128xbf16, #tpu.memory_space<vmem>>, vector<16x128xbf16>
    %c0_1 = arith.constant 0 : index
    %c0_2 = arith.constant 0 : index
    %1 = vector.load %arg2[%c0_1, %c0_2] : memref<128x128xbf16, #tpu.memory_space<vmem>>, vector<128x128xbf16>
    %cst = arith.constant dense<0.000000e+00> : vector<16x128xf32>
    %2 = tpu.matmul %0, %1, %cst {dimension_numbers = #tpu.dot_dimension_numbers<[1], [0], [0], [1], [0, 0, 1, 1], [], []>} : vector<16x128xbf16>, vector<128x128xbf16>, vector<16x128xf32> -> vector<16x128xf32>
    %c0_3 = arith.constant 0 : index
    %c0_4 = arith.constant 0 : index
    %3 = vector.load %arg3[%c0_3, %c0_4] : memref<1x128xf32, #tpu.memory_space<vmem>>, vector<1x128xf32>
    %4 = vector.broadcast %3 : vector<1x128xf32> to vector<16x128xf32>
    %5 = arith.addf %2, %4 : vector<16x128xf32>
    %cst_5 = arith.constant 0.000000e+00 : f32
    %cst_6 = arith.constant 6.000000e+00 : f32
    %6 = vector.broadcast %cst_5 : f32 to vector<16x128xf32>
    %7 = arith.maximumf %6, %5 : vector<16x128xf32>
    %8 = vector.broadcast %cst_6 : f32 to vector<16x128xf32>
    %9 = arith.minimumf %8, %7 : vector<16x128xf32>
    %10 = arith.truncf %9 : vector<16x128xf32> to vector<16x128xbf16>
    %c0_7 = arith.constant 0 : index
    %c0_8 = arith.constant 0 : index
    %11 = vector.load %arg4[%c0_7, %c0_8] : memref<16x128xbf16, #tpu.memory_space<vmem>>, vector<16x128xbf16>
    tpu.vector_store %arg4[%c0_7, %c0_8], %10 {strides = array<i32>} : memref<16x128xbf16, #tpu.memory_space<vmem>>, vector<16x128xbf16>,
    return
  }
  func.func @transform_0(%arg0: i32) -> (i32, i32) {
    %c0_i32 = arith.constant 0 : i32
    %c0_i32_0 = arith.constant 0 : i32
    return %arg0, %c0_i32 : i32, i32
  }
  func.func @transform_1(%arg0: i32) -> (i32, i32) {
    %c0_i32 = arith.constant 0 : i32
    %c0_i32_0 = arith.constant 0 : i32
    %c0_i32_1 = arith.constant 0 : i32
    return %c0_i32, %c0_i32_0 : i32, i32
  }
  func.func @transform_2(%arg0: i32) -> (i32, i32) {
    %c0_i32 = arith.constant 0 : i32
    %c0_i32_0 = arith.constant 0 : i32
    %c0_i32_1 = arith.constant 0 : i32
    return %c0_i32, %c0_i32_0 : i32, i32
  }
  func.func @transform_3(%arg0: i32) -> (i32, i32) {
    %c0_i32 = arith.constant 0 : i32
    %c0_i32_0 = arith.constant 0 : i32
    return %arg0, %c0_i32 : i32, i32
  }
}

</mosaic_0001>

<bundles_post_ra>
// kernel: tpu_custom_call.1
= control target key start
LH: loop header
LB: loop body
LE: loop exit
PB: predicated region body
PF: predicated region fallthrough
CT: control target
= control target key end

     0   :  { %8 = vsyncpa [#allocation3], 0  ;;  %s920_s0 = inlined_call_operand.hbm [shape: bf16[64,128], index: 0, kind: input, shape index: {}]   ;;  %s921_s1 = inlined_call_operand.hbm [shape: bf16[128,128], index: 1, kind: input, shape index: {}]   ;;  %s922_s2 = inlined_call_operand.vmem [shape: f32[1,128], index: 2, kind: input, shape index: {}]   ;;  %s923_s3 = inlined_call_operand.hbm [shape: bf16[64,128], index: 3, kind: output, shape index: {}]  }
   0x1   :  { %10 = vsyncpa [#allocation3 + $0x1], 0 }
   0x2   :  { %11 = vsyncpa [#allocation6], 0 }
   0x3   :  { %12 = vsyncpa [#allocation4], 0 }
   0x4   :  { %14 = vsyncpa [#allocation4 + $0x1], 0  ;;  %s729_s12 = smov 0   ;;  %s731_s13 = smov 0  }
   0x5   :  { %s733_s14 = smov 0   ;;  %s735_s15 = smov 0  }
   0x6 LB: > { %s750_s16 = sadd.s32 4294967295, %s698_s15   ;;  %s438_s17 = sadd.s32 4294967294, %s698_s15   ;;  %s698_s15 = sphi %s735_s15, %s944_s15   ;;  %s694_s14 = sphi %s733_s14, %s943_s14   ;;  %s690_s13 = sphi %s731_s13, %s942_s13   ;;  %s686_s12 = sphi %s729_s12, %s941_s12  }
   0x7   : > { %p40_p0 = scmp.ne.s32.totalorder %s690_s13, %s686_s12  ;;  %p924_p1 = scmp.eq.s32.totalorder %s750_s16, 0 }
   0x8   : > { %p112_p3 = scmp.eq.s32.totalorder %s438_s17, 3  ;;  %p439_p5 = scmp.ge.s32.totalorder %s698_s15, 1 }
   0x9   : > { %p759_p4 = por %p924_p1, %p40_p0  ;;  %p119_p7 = scmp.lt.s32.totalorder %s698_s15, 5 }
   0xa   : > { %p764_p6 = por %p112_p3, %p40_p0  ;;  %s700_s21 = smov [#allocation5]  }
   0xb   : > { %s928_s18 = scalar_select %p759_p4, 1, 0 }
   0xc   : > { %s929_s19 = scalar_select %p764_p6, 1, 0 }
   0xd   : > { %p769_p8 = pnand %p439_p5, %p119_p7  ;;  %s131_s22 = sshll.u32 %s700_s21, 4  ;;  %s132_s22 = int_to_ptr.vmem [resolvable:$true] %s131_s22 }
   0xe   : > { %s782_s24 = sadd.s32 1, %s698_s15   ;;  %s27_s25 = sadd.s32 1, %s694_s14 }
   0xf   : > { %s930_s20 = scalar_select %p769_p8, 1, 0 }
  0x10   : > { %p512_p9 = pneg %p769_p8  ;;  %s24_s26 = ssub.s32 %s698_s15, %s782_s24 }
  0x11   : > { %s587_s27 = scalar_lea.vmem %s132_s22, 1024  ;;  %p595_p3 = scmp.lt.s32.totalorder %s132_s22, %s132_s22 }
  0x12   : > { %p777_p10 = pnand %p512_p9, %p924_p1  ;;  %p588_p12 = scmp.ne.s32.totalorder %s132_s22, %s587_s27 }
  0x13   : > { %p596_p5 = scmp.lt.s32.totalorder %s587_s27, %s587_s27 }
  0x14   : > { %p578_p11 = pneg %p777_p10 }
  0x15   : > { %p597_p7 = por %p596_p5, %p595_p3 }
  0x16   : > { %p590_p13 = pnand %p588_p12, %p578_p11 }
  0x18   : > { %p591_p0 = pneg %p590_p13 }
  0x1a   : > { %p598_p2 = pnand %p597_p7, %p591_p0 }
  0x1c   : > { %601 = shalt.err (!%p598_p2)
}
  0x1d   : > { %s701_s28 = smov 64   ;;  %s702_s29 = smov 4  }
  0x1e   : > { %515 = dma.hbm_to_vmem [thread:$0]  (!%p777_p10), %s921_s1, 1024, %s132_s22, [#allocation6], %s701_s28, %s701_s28, %s702_s29  }
  0x1f   : > { %p25_p2 = scmp.eq.s32.totalorder %s24_s26, 0  ;;  %p34_p9 = scmp.ne.s32.totalorder %s694_s14, %s690_s13 }
  0x20   : > { %p35_p11 = scmp.eq.s32.totalorder %s698_s15, 0  ;;  %p525_p12 = scmp.lt.s32.totalorder %s698_s15, 4 }
  0x21   : > { %s802_s5 = scalar_select %p25_p2, %s694_s14, %s27_s25  }
  0x22   : > { %p36_p13 = por %p35_p11, %p34_p9  ;;  %p932_p0 = scmp.eq.s32.totalorder %s750_s16, 3 }
  0x23   : > { %s148_s7 = sand.u32 1, %s694_s14   ;;  %s466_s8 = sshll.u32 %s698_s15, 7 }
  0x24   : > { %p806_p3 = por %p932_p0, %p34_p9  ;;  %s442_s9 = sshll.u32 %s148_s7, 3 }
  0x25   : > { %s815_s17 = scalar_lea.hbm %s920_s0, %s466_s8  ;;  %s152_s21 = scalar_lea.vmem [#allocation2], %s442_s9 }
  0x26   : > { %s933_s6 = scalar_select %p806_p3, 1, 0 }
  0x27   : > { %s159_s22 = sshll.u32 %s152_s21, 4  ;;  %p817_p10 = pnand %p525_p12, %p36_p13  ;;  %s821_s22 = int_to_ptr.vmem [resolvable:$true] %s159_s22 }
  0x28   : > { %s823_s25 = scalar_lea.sflag [#allocation3], %s148_s7  ;;  %s602_s26 = scalar_lea.hbm %s815_s17, 128 }
  0x29   : > { %p603_p5 = scmp.ne.s32.totalorder %s815_s17, %s602_s26  ;;  %p604_p7 = pneg %p817_p10 }
  0x2a   : > { %s607_s4 = scalar_lea.hbm %s920_s0, 512  ;;  %p608_p11 = scmp.lt.s32.totalorder %s815_s17, %s920_s0 }
  0x2b   : > { %p605_p2 = pnand %p604_p7, %p603_p5  ;;  %p609_p12 = scmp.lt.s32.totalorder %s607_s4, %s602_s26 }
  0x2d   : > { %p606_p9 = pneg %p605_p2  ;;  %p610_p13 = por %p609_p12, %p608_p11 }
  0x2f   : > { %p611_p0 = pnand %p610_p13, %p606_p9 }
  0x31   : > { %614 = shalt.err (!%p611_p0)
}
  0x32   : > { %s615_s7 = scalar_lea.vmem %s821_s22, 128  ;;  %s703_s10 = smov [#allocation2]  }
  0x33   : > { %p616_p1 = scmp.ne.s32.totalorder %s821_s22, %s615_s7  ;;  %s620_s11 = sshll.u32 %s703_s10, 4  ;;  %s621_s11 = int_to_ptr.vmem [resolvable:$false] %s620_s11 }
  0x34   : > { %s622_s21 = scalar_lea.vmem %s621_s11, 256  ;;  %p623_p2 = scmp.lt.s32.totalorder %s821_s22, %s621_s11 }
  0x35   : > { %p618_p6 = pnand %p616_p1, %p604_p7  ;;  %p624_p3 = scmp.lt.s32.totalorder %s622_s21, %s615_s7 }
  0x37   : > { %p619_p5 = pneg %p618_p6  ;;  %p625_p4 = por %p624_p3, %p623_p2 }
  0x39   : > { %p626_p8 = pnand %p625_p4, %p619_p5 }
  0x3b   : > { %629 = shalt.err (!%p626_p8)
}
  0x3c   : > { %519 = dma.hbm_to_vmem [thread:$0]  (!%p817_p10), %s815_s17, 128, %s821_s22, %s823_s25, %s701_s28, %s701_s28, %s702_s29  }
  0x3d   : > { %p935_p1 = scmp.ne.s32.totalorder %s930_s20, 0 }
  0x3e   : > { %s850_s26 = sand.u32 (!%p935_p1), 1, %s690_s13   ;;  %p936_p4 = scmp.ne.s32.totalorder (!%p935_p1), %s928_s18, 0 }
  0x3f   : > { %171 = sbr.rel (%p935_p1) target bundleno = 324 (0x144), region = 32  ;;  %s446_s27 = sshll.u32 (!%p935_p1), %s850_s26, 3 }
  0x40   : > { %s174_s30 = scalar_lea.sflag (!%p935_p1), [#allocation3], %s850_s26  ;;  %s856_s23 = scalar_lea.vmem (!%p935_p1), [#allocation2], %s446_s27 }
  0x44   : > { %673 = dma.done.wait (%p936_p4), %s174_s30, 128  }
  0x45   : > { %675 = vsyncadd (%p936_p4), %s174_s30, 4294967168  ;;  %p937_p6 = scmp.eq.s32.totalorder %s750_s16, 0 }
  0x47   : > { %677 = dma.done.wait (%p937_p6), [#allocation6], 1024   ;;  %p938_p8 = pmov %p937_p6 }
  0x48   : > { %v704_v0 = vmov 0.0   ;;  %vm705_vm0 = vmmov 0   ;;  %v567_v1 = vld [vmem:[#allocation5 + $0x38] sm:$0xff]   ;;  %v568_v2 = vld [vmem:[#allocation5 + $0x30] sm:$0xff]   ;;  %v569_v3 = vld [vmem:[#allocation5 + $0x28] sm:$0xff]   ;;  %s203_s28 = scalar_lea.vmem [#allocation7], %s446_s27 }
  0x49   : > { %679 = vsyncadd (%p938_p8), [#allocation6], 4294966272  ;;  %484 = vmatprep.subr.bf16.mxu0 %v704_v0  ;;  %500 = vmatprep.mubr.msk.bf16.mxu0 %vm705_vm0, %v704_v0  ;;  %v570_v4 = vld [vmem:[#allocation5 + $0x20] sm:$0xff]   ;;  %v571_v5 = vld [vmem:[#allocation5 + $0x18] sm:$0xff]   ;;  %s355_s29 = sshll.u32 %s203_s28, 4  ;;  %s469_s17 = sshll.u32 %s750_s16, 7  ;;  %s873_s29 = int_to_ptr.vmem [resolvable:$true] %s355_s29 }
  0x4a   : > { %485 = vmatpush3.bf16.msra.mxu0 %v567_v1  ;;  %v572_v6 = vld [vmem:[#allocation5 + $0x10] sm:$0xff]   ;;  %v573_v7 = vld [vmem:[#allocation5 + $0x8] sm:$0xff]   ;;  %v574_v8 = vld [vmem:[#allocation5] sm:$0xff]   ;;  %s878_s4 = scalar_lea.hbm %s923_s3, %s469_s17  ;;  %s342_s8 = scalar_lea.sflag [#allocation4], %s850_s26 }
  0x4b   : > { %486 = vmatprep.subr.bf16.mxu0 %v704_v0  ;;  %v575_v9 = vld [vmem:[%s856_s23] sm:$0xff]   ;;  %s630_s9 = scalar_lea.vmem %s873_s29, 128  ;;  %p939_p10 = scmp.ne.s32.totalorder %s933_s6, 0 }
  0x4c   : > { %v449_v10 = vld [vmem:[%s922_s2] ss:$0 sm:$0xff]  ;;  %p631_p3 = scmp.ne.s32.totalorder %s873_s29, %s630_s9  ;;  %s706_s16 = smov [#allocation7]  }
  0x4d   : > { %s634_s7 = sshll.u32 %s706_s16, 4  ;;  %s635_s7 = int_to_ptr.vmem [resolvable:$false] %s634_s7 }
  0x4e   : > { %487 = vmatpush3.bf16.msra.mxu0 %v568_v2  ;;  %p632_p7 = pnand %p631_p3, %p939_p10  ;;  %s636_s10 = scalar_lea.vmem %s635_s7, 256 }
  0x4f   : > { %488 = vmatprep.subr.bf16.mxu0 %v704_v0  ;;  %p637_p11 = scmp.lt.s32.totalorder %s873_s29, %s635_s7  ;;  %p638_p12 = scmp.lt.s32.totalorder %s636_s10, %s630_s9 }
  0x50   : > { %p633_p9 = pneg %p632_p7 }
  0x51   : > { %p639_p13 = por %p638_p12, %p637_p11 }
  0x52   : > { %489 = vmatpush3.bf16.msra.mxu0 %v569_v3 }
  0x53   : > { %490 = vmatprep.subr.bf16.mxu0 %v704_v0  ;;  %p640_p0 = pnand %p639_p13, %p633_p9 }
  0x56   : > { %491 = vmatpush3.bf16.msra.mxu0 %v570_v4 }
  0x57   : > { %492 = vmatprep.subr.bf16.mxu0 %v704_v0 }
  0x5a   : > { %493 = vmatpush3.bf16.msra.mxu0 %v571_v5 }
  0x5b   : > { %494 = vmatprep.subr.bf16.mxu0 %v704_v0 }
  0x5e   : > { %495 = vmatpush3.bf16.msra.mxu0 %v572_v6 }
  0x5f   : > { %496 = vmatprep.subr.bf16.mxu0 %v704_v0 }
  0x62   : > { %497 = vmatpush3.bf16.msra.mxu0 %v573_v7 }
  0x63   : > { %498 = vmatprep.subr.bf16.mxu0 %v704_v0 }
  0x66   : > { %499 = vmatpush3.bf16.msra.mxu0 %v574_v8 }
  0x69   : > { %501 = vmatmul.mubr.bf16.vlgmr.msra.gmra.mxu0 %v575_v9 }
 0x129   : > { %v320_v11 = vpop.f32.mrf.mxu0 }
 0x12a   : > { %v321_v12 = vadd.f32 %v449_v10, %v320_v11 }
 0x12b   : > { %v502_v13 = vpop.f32.mrf.mxu0 }
 0x12c   : > { %v327_v15 = vmax.f32 %v321_v12, 0.0 }
 0x12d   : > { %v323_v14 = vpop.f32.mrf.mxu0 }
 0x12e   : > { %v324_v16 = vadd.f32 %v449_v10, %v323_v14  ;;  %v329_v19 = vmin.f32 %v327_v15, 6.0 }
 0x12f   : > { %v503_v17 = vpop.f32.mrf.mxu0 }
 0x130   : > { %v328_v18 = vmax.f32 %v324_v16, 0.0 }
 0x132   : > { %v330_v20 = vmin.f32 %v328_v18, 6.0 }
 0x134   : > { %v473_v21 = vpack.c.bf16 %v330_v20, %v329_v19 }
 0x136   : > { %474 = vst [vmem:[%s203_s28] sm:$0xff] %v473_v21  }
 0x137   : > { %643 = shalt.err (!%p640_p0)
}
 0x138   : > { %s644_s11 = scalar_lea.hbm %s878_s4, 128  ;;  %s648_s30 = scalar_lea.hbm %s923_s3, 512 }
 0x139   : > { %p645_p5 = scmp.ne.s32.totalorder %s878_s4, %s644_s11  ;;  %p649_p4 = scmp.lt.s32.totalorder %s878_s4, %s923_s3 }
 0x13a   : > { %p650_p6 = scmp.lt.s32.totalorder %s648_s30, %s644_s11 }
 0x13b   : > { %p646_p2 = pnand %p645_p5, %p939_p10 }
 0x13c   : > { %p651_p8 = por %p650_p6, %p649_p4 }
 0x13d   : > { %p647_p1 = pneg %p646_p2 }
 0x13f   : > { %p652_p3 = pnand %p651_p8, %p647_p1 }
 0x141   : > { %655 = shalt.err (!%p652_p3)
}
 0x142   : > { %s707_s20 = smov 64   ;;  %s708_s28 = smov 4  }
 0x143   : > { %510 = dma.vmem_to_hbm [thread:$0]  (%p939_p10), %s873_s29, 128, %s878_s4, %s342_s8, %s707_s20, %s707_s20, %s708_s28  }
 0x144 PF: > { %p527_p7 = scmp.ge.s32.totalorder %s698_s15, 2  ;;  %s370_s17 = sand.u32 1, %s686_s12  }
 0x145   : > { %p940_p9 = scmp.ne.s32.totalorder %s929_s19, 0  ;;  %s371_s22 = scalar_lea.sflag [#allocation4], %s370_s17 }
 0x147   : > { %p521_p11 = pnand %p527_p7, %p940_p9 }
 0x149   : > { %p522_p12 = pneg %p521_p11 }
 0x14b   : > { %681 = dma.done.wait (%p522_p12), %s371_s22, 128  }
 0x14c   : > { %683 = vsyncadd (%p522_p12), %s371_s22, 4294967168  ;;  %p17_p13 = scmp.ge.s32.totalorder %s782_s24, 6   ;;  %s941_s12 = smov %s690_s13 }
 0x14d   : > { %s942_s13 = smov %s694_s14  ;;  %s943_s14 = smov %s802_s5 }
 0x14e   : > { %s944_s15 = smov %s782_s24  ;;  %19 = sbr.rel (!%p17_p13) target bundleno = 6 (0x6), region = 81 }
 0x153   :  { %376 = vsyncpa [#allocation3], 1 }
 0x154   :  { %378 = vsyncpa [#allocation3 + $0x1], 1 }
 0x155   :  { %379 = vsyncpa [#allocation6], 1 }
 0x156   :  { %380 = vsyncpa [#allocation4], 1 }
 0x157   :  { %382 = vsyncpa [#allocation4 + $0x1], 1 }

</bundles_post_ra>
